<compile_context>
chip_gen: v5e
topology: v5e:2x2
jax: 0.10.0
libtpu: 0.0.40
codegen_flags: <defaults>
</compile_context>

<pallas_src>
import functools

import jax
import jax.numpy as jnp
from jax.experimental import pallas as pl
from jax.experimental.pallas import tpu as pltpu


# ------------------------------ small helpers -------------------------------


def _tile(dim, target, align):
    """Largest tile <= target that divides `dim` and is `align`-aligned.

    Falls back to the full dim only when no aligned divisor exists, so
    non-multiple shapes keep a pipelined grid instead of one giant block.
    """
    if dim <= target:
        return dim
    if dim % target == 0:
        return target
    for t in range(target, 0, -1):
        if dim % t == 0 and t % align == 0:
            return t
    return dim


def _mosaic_params(dims, block_bytes, scratch_bytes=0):
    """CompilerParams with an explicit VMEM limit derived from the footprint."""
    need = 2 * int(block_bytes) + int(scratch_bytes)   # blocks are double-buffered
    limit = max(2 * need + (2 << 20), 16 << 20)
    limit = min(limit, 48 << 20)                       # stays inside v7x 64 MiB
    return pltpu.CompilerParams(dimension_semantics=dims,
                                vmem_limit_bytes=limit)


def _head_group(D, n_head):
    """Lane-aligned head-group width for attention (128 lanes when possible)."""
    dh = D // n_head
    if D % 128 == 0 and 128 % dh == 0:
        return 128, D // 128
    return D, 1          # fallback: all heads in one group (toy / odd configs)


def _qkv_group_perm(D, dgh):
    """Column permutation turning [Q | K | V] into per-group [q|k|v] runs."""
    cols = []
    for hg in range(D // dgh):
        lo = hg * dgh
        for part in range(3):
            cols.extend(range(part * D + lo, part * D + lo + dgh))
    return jnp.asarray(cols, dtype=jnp.int32)


# --------------------- fused LayerNorm + matmul (+GELU) ---------------------


def _ln_linear_kernel(x_ref, g_ref, bln_ref, w_ref, b_ref, o_ref, xn_ref, *,
                      gelu):
    # LayerNorm (f32) is computed once per M tile (j == 0) and cached in VMEM;
    # the remaining N tiles reuse the cached bf16 result.
    @pl.when(pl.program_id(1) == 0)
    def _():
        x = x_ref[...].astype(jnp.float32)                   # (tm, K)
        mu = jnp.mean(x, axis=-1, keepdims=True)
        xc = x - mu
        var = jnp.mean(xc * xc, axis=-1, keepdims=True)
        xn = xc * jax.lax.rsqrt(var + 1e-5) * g_ref[...] + bln_ref[...]
        xn_ref[...] = xn.astype(xn_ref.dtype)

    # bf16 matmul, f32 accumulation on the MXU.
    acc = jnp.dot(xn_ref[...], w_ref[...],
                  preferred_element_type=jnp.float32) + b_ref[...]
    if gelu:
        # GPT-2 "gelu_new" (tanh approximation), f32, tanh on EUP.
        c = jnp.float32(0.7978845608028654)  # sqrt(2/pi)
        acc = 0.5 * acc * (1.0 + jnp.tanh(c * (acc + 0.044715 * acc * acc * acc)))
    o_ref[...] = acc.astype(o_ref.dtype)


def ln_linear(x, g, bln, w, b, *, gelu=False, tm_target=512, tn_target=256):
    """LayerNorm(x) @ w + b (GPT-2 Conv1D), optional gelu. x:(M,K) -> (M,N)."""
    M, K = x.shape
    N = w.shape[1]
    tm = _tile(M, tm_target, 8)
    tn = _tile(N, tn_target, 128)
    esz = x.dtype.itemsize
    block_bytes = tm * K * esz + 2 * K * 4 + K * tn * esz + tn * 4 + tm * tn * esz
    scratch_bytes = tm * K * esz
    kern = functools.partial(_ln_linear_kernel, gelu=gelu)
    return pl.pallas_call(
        kern,
        out_shape=jax.ShapeDtypeStruct((M, N), x.dtype),
        grid=(M // tm, N // tn),
        in_specs=[
            pl.BlockSpec((tm, K), lambda i, j: (i, 0)),
            pl.BlockSpec((1, K), lambda i, j: (0, 0)),
            pl.BlockSpec((1, K), lambda i, j: (0, 0)),
            pl.BlockSpec((K, tn), lambda i, j: (0, j)),
            pl.BlockSpec((1, tn), lambda i, j: (0, j)),
        ],
        out_specs=pl.BlockSpec((tm, tn), lambda i, j: (i, j)),
        scratch_shapes=[pltpu.VMEM((tm, K), x.dtype)],       # LN cache
        # N axis "arbitrary" so the LN cache stays coherent per core; the M
        # axis still gives megacore its parallelism.
        compiler_params=_mosaic_params(("parallel", "arbitrary"),
                                       block_bytes, scratch_bytes),
    )(x, g.reshape(1, K), bln.reshape(1, K), w, b.reshape(1, N))


# ---------------- matmul + bias + fused residual add (full K) ---------------


def _linear_res_kernel(x_ref, w_ref, b_ref, r_ref, o_ref):
    acc = jnp.dot(x_ref[...], w_ref[...], preferred_element_type=jnp.float32)
    acc = acc + b_ref[...] + r_ref[...].astype(jnp.float32)
    o_ref[...] = acc.astype(o_ref.dtype)


def linear_residual(x, w, b, res, *, tm_target=512, tn_target=256):
    """(x @ w + b) + res. Full-K blocks (GPT-2 K <= 4D easily fits VMEM)."""
    M, K = x.shape
    N = w.shape[1]
    tm = _tile(M, tm_target, 8)
    tn = _tile(N, tn_target, 128)
    esz = x.dtype.itemsize
    block_bytes = tm * K * esz + K * tn * esz + tn * 4 + 2 * tm * tn * esz
    return pl.pallas_call(
        _linear_res_kernel,
        out_shape=jax.ShapeDtypeStruct((M, N), x.dtype),
        grid=(M // tm, N // tn),
        in_specs=[
            pl.BlockSpec((tm, K), lambda i, j: (i, 0)),
            pl.BlockSpec((K, tn), lambda i, j: (0, j)),
            pl.BlockSpec((1, tn), lambda i, j: (0, j)),
            pl.BlockSpec((tm, tn), lambda i, j: (i, j)),
        ],
        out_specs=pl.BlockSpec((tm, tn), lambda i, j: (i, j)),
        compiler_params=_mosaic_params(("parallel", "parallel"), block_bytes),
    )(x, w, b.reshape(1, N), res)


# -------------------- flash-style causal self-attention ---------------------


def _flash_attn_kernel(q_ref, kv_ref, o_ref, m_sc, l_sc, acc_sc, *,
                       dgh, dh, tq, tk, scale):
    ki = pl.program_id(3)
    g = dgh // dh                                   # heads per lane group

    @pl.when(ki == 0)
    def _():
        m_sc[...] = jnp.full_like(m_sc, -jnp.inf)
        l_sc[...] = jnp.zeros_like(l_sc)
        acc_sc[...] = jnp.zeros_like(acc_sc)

    q_start = pl.program_id(2) * tq
    k_start = ki * tk

    # Skip kv tiles lying entirely above the causal diagonal (ki=0 never skips,
    # so running stats are always initialized with finite logits first).
    @pl.when(k_start <= q_start + (tq - 1))
    def _():
        row = q_start + jax.lax.broadcasted_iota(jnp.int32, (tq, tk), 0)
        col = k_start + jax.lax.broadcasted_iota(jnp.int32, (tq, tk), 1)
        causal = col <= row
        for h in range(g):                          # static unroll, g small
            sl = slice(h * dh, (h + 1) * dh)
            qh = q_ref[0, :, sl]                                    # (tq, dh)
            kh = kv_ref[0, :, dgh + h * dh:dgh + (h + 1) * dh]      # (tk, dh)
            vh = kv_ref[0, :, 2 * dgh + h * dh:2 * dgh + (h + 1) * dh]
            # f32 logits on the MXU; scale in f32 after the matmul.
            s = jnp.einsum("qd,kd->qk", qh, kh,
                           preferred_element_type=jnp.float32) * scale
            s = jnp.where(causal, s, jnp.float32(-1e30))
            m_prev = m_sc[:, h:h + 1]                               # (tq, 1)
            m_new = jnp.maximum(m_prev, jnp.max(s, axis=-1, keepdims=True))
            alpha = jnp.exp(m_prev - m_new)
            p = jnp.exp(s - m_new)
            l_sc[:, h:h + 1] = alpha * l_sc[:, h:h + 1] + jnp.sum(
                p, axis=-1, keepdims=True)
            acc_sc[:, sl] = alpha * acc_sc[:, sl] + jnp.dot(
                p.astype(vh.dtype), vh, preferred_element_type=jnp.float32)
            m_sc[:, h:h + 1] = m_new

    @pl.when(ki == pl.num_programs(3) - 1)
    def _():
        for h in range(g):
            sl = slice(h * dh, (h + 1) * dh)
            acc_sc[:, sl] = acc_sc[:, sl] / l_sc[:, h:h + 1]  # exact divide
        o_ref[0] = acc_sc[...].astype(o_ref.dtype)            # lane-dense store


def flash_causal_attention(qkv, n_head, *, tq_target=256, tk_target=256):
    """qkv: (B, T, 3D) in head-group-interleaved column order -> (B, T, D)."""
    B, T, threeD = qkv.shape
    D = threeD // 3
    dh = D // n_head
    dgh, HG = _head_group(D, n_head)
    g = dgh // dh
    tq = _tile(T, tq_target, 8)
    tk = _tile(T, tk_target, 8)
    kern = functools.partial(_flash_attn_kernel, dgh=dgh, dh=dh, tq=tq, tk=tk,
                             scale=1.0 / float(dh) ** 0.5)
    esz = qkv.dtype.itemsize
    block_bytes = (tq + tk) * 3 * dgh * esz + tq * dgh * esz
    scratch_bytes = (2 * g + dgh) * tq * 4
    return pl.pallas_call(
        kern,
        out_shape=jax.ShapeDtypeStruct((B, T, D), qkv.dtype),
        grid=(B, HG, T // tq, T // tk),
        in_specs=[
            # q rows of this group's [q|k|v] run (lane-aligned 3*dgh slab).
            pl.BlockSpec((1, tq, 3 * dgh), lambda b, hg, qi, ki: (b, qi, hg)),
            # kv rows of the same group's run.
            pl.BlockSpec((1, tk, 3 * dgh), lambda b, hg, qi, ki: (b, ki, hg)),
        ],
        out_specs=pl.BlockSpec((1, tq, dgh), lambda b, hg, qi, ki: (b, qi, hg)),
        scratch_shapes=[
            pltpu.VMEM((tq, g), jnp.float32),     # running max per head
            pltpu.VMEM((tq, g), jnp.float32),     # running denom per head
            pltpu.VMEM((tq, dgh), jnp.float32),   # output accumulator
        ],
        compiler_params=_mosaic_params(
            ("parallel", "parallel", "parallel", "arbitrary"),
            block_bytes, scratch_bytes),
    )(qkv, qkv)


# -------------- final LayerNorm fused with the [:, :, -1] slice -------------


def _lnf_last_kernel(x_ref, g_ref, b_ref, o_ref):
    x = x_ref[...].astype(jnp.float32)                      # (tm, D)
    mu = jnp.mean(x, axis=-1, keepdims=True)
    xc = x - mu
    var = jnp.mean(xc * xc, axis=-1, keepdims=True)
    inv = jax.lax.rsqrt(var + 1e-5)
    y_last = xc[:, -1:] * inv * g_ref[:, -1:] + b_ref[:, -1:]
    o_ref[...] = y_last.astype(o_ref.dtype)


def layernorm_last(x, g, b, *, tm_target=512):
    """LayerNorm(x)[:, -1:] only — never writes the full (M, D) tensor."""
    M, D = x.shape
    tm = _tile(M, tm_target, 8)
    esz = x.dtype.itemsize
    block_bytes = tm * D * esz + 2 * D * 4 + tm * 4
    return pl.pallas_call(
        _lnf_last_kernel,
        out_shape=jax.ShapeDtypeStruct((M, 1), jnp.float32),
        grid=(M // tm,),
        in_specs=[
            pl.BlockSpec((tm, D), lambda i: (i, 0)),
            pl.BlockSpec((1, D), lambda i: (0, 0)),
            pl.BlockSpec((1, D), lambda i: (0, 0)),
        ],
        out_specs=pl.BlockSpec((tm, 1), lambda i: (i, 0)),
        # TODO(synk): output lane width is 1 (masked stores); only worth a
        # lane-dense (B, T) layout if this kernel ever shows in a profile.
        compiler_params=_mosaic_params(("parallel",), block_bytes),
    )(x, g.reshape(1, D), b.reshape(1, D))


# ------------------------------ GPT-2 forward -------------------------------


def gpt2_embed_forward(params, tokens):
    """GPTEmbed.forward: GPT-2 last_hidden_state[:, :, -1] -> (B, T)."""
    B, T = tokens.shape
    D = params["wte"].shape[1]
    H = params["n_head"]
    M = B * T

    # Embedding lookups (glue, plain JAX gather).
    h = (params["wte"][tokens] + params["wpe"][:T][None, :, :]).reshape(M, D)

    for blk in params["blocks"]:
        # --- attention sub-block: ln1 fused into the grouped QKV matmul ---
        qkv = ln_linear(h, blk["ln1_g"], blk["ln1_b"],
                        blk["w_qkv"], blk["b_qkv"])                 # (M, 3D)
        a = flash_causal_attention(qkv.reshape(B, T, 3 * D), H)     # (B, T, D)
        h = linear_residual(a.reshape(M, D),
                            blk["w_attn_proj"], blk["b_attn_proj"], h)

        # --- MLP sub-block: ln2 fused into fc+gelu matmul ---
        m = ln_linear(h, blk["ln2_g"], blk["ln2_b"],
                      blk["w_fc"], blk["b_fc"], gelu=True)          # (M, 4D)
        h = linear_residual(m, blk["w_mproj"], blk["b_mproj"], h)

    # Final LN fused with the last-hidden-element slice.
    out = layernorm_last(h, params["lnf_g"], params["lnf_b"])       # (M, 1) f32
    return out.reshape(B, T)


# ------------------------------ param init ----------------------------------


def init_params(key, vocab, n_pos, D, H, n_layer):
    def nrm(k, shape):
        return (0.02 * jax.random.normal(k, shape, dtype=jnp.float32)).astype(
            jnp.bfloat16)

    # Columns of w_qkv / b_qkv are stored head-group-interleaved ([q|k|v] run
    # per lane-aligned head group) so attention BlockSpecs DMA lane-aligned
    # slabs. The attention kernel writes natural head order, so nothing else
    # changes. (Identity permutation when the fallback group dgh == D is used.)
    dgh, _ = _head_group(D, H)
    perm = _qkv_group_perm(D, dgh)

    keys = jax.random.split(key, 2 + n_layer)
    params = {
        "wte": nrm(keys[0], (vocab, D)),
        "wpe": nrm(keys[1], (n_pos, D)),
        "lnf_g": jnp.ones((D,), jnp.float32),
        "lnf_b": jnp.zeros((D,), jnp.float32),
        "n_head": H,
        "blocks": [],
    }
    for l in range(n_layer):
        ks = jax.random.split(keys[2 + l], 4)
        params["blocks"].append(
            {
                "ln1_g": jnp.ones((D,), jnp.float32),
                "ln1_b": jnp.zeros((D,), jnp.float32),
                "w_qkv": nrm(ks[0], (D, 3 * D))[:, perm],
                "b_qkv": jnp.zeros((3 * D,), jnp.float32)[perm],
                "w_attn_proj": nrm(ks[1], (D, D)),
                "b_attn_proj": jnp.zeros((D,), jnp.float32),
                "ln2_g": jnp.ones((D,), jnp.float32),
                "ln2_b": jnp.zeros((D,), jnp.float32),
                "w_fc": nrm(ks[2], (D, 4 * D)),
                "b_fc": jnp.zeros((4 * D,), jnp.float32),
                "w_mproj": nrm(ks[3], (4 * D, D)),
                "b_mproj": jnp.zeros((D,), jnp.float32),
            }
        )
    return params


if __name__ == "__main__":
    key = jax.random.PRNGKey(0)
    B, T, D, H, V, L = 2, 8, 32, 4, 64, 2  # toy "gpt2-small"-shaped config
    pkey, xkey = jax.random.split(key)
    params = init_params(pkey, V, T, D, H, L)
    tokens = jax.random.randint(xkey, (B, T), 0, V, dtype=jnp.int32)

    out = gpt2_embed_forward(params, tokens)
    out = jax.block_until_ready(out)
    assert out.shape == (B, T), out.shape
    assert out.dtype == jnp.float32
    print("KERNEL_OK")
</pallas_src>

<mosaic_0001>
module attributes {stable_mosaic.version = 11 : i64} {
  func.func @_ln_linear_kernel(%arg0: i32, %arg1: i32, %arg2: memref<16x32xbf16, #tpu.memory_space<vmem>>, %arg3: memref<1x32xf32, #tpu.memory_space<vmem>>, %arg4: memref<1x32xf32, #tpu.memory_space<vmem>>, %arg5: memref<32x96xbf16, #tpu.memory_space<vmem>>, %arg6: memref<1x96xf32, #tpu.memory_space<vmem>>, %arg7: memref<16x96xbf16, #tpu.memory_space<vmem>>, %arg8: memref<16x32xbf16, #tpu.memory_space<vmem>>) attributes {dimension_semantics = [#tpu.dimension_semantics<parallel>, #tpu.dimension_semantics<arbitrary>], iteration_bounds = array<i64: 1, 1>, scalar_prefetch = 0 : i64, scratch_operands = 1 : i64, tpu.core_type = #tpu.core_type<tc>, window_params = [{transform_indices = @transform_0, window_bounds = array<i64: 16, 32>}, {pipeline_mode = #tpu.pipeline_mode<synchronous>, transform_indices = @transform_1, window_bounds = array<i64: 1, 32>}, {pipeline_mode = #tpu.pipeline_mode<synchronous>, transform_indices = @transform_2, window_bounds = array<i64: 1, 32>}, {transform_indices = @transform_3, window_bounds = array<i64: 32, 96>}, {transform_indices = @transform_4, window_bounds = array<i64: 1, 96>}, {transform_indices = @transform_5, window_bounds = array<i64: 16, 96>}]} {
    %c0_i32 = arith.constant 0 : i32
    %0 = arith.cmpi eq, %arg1, %c0_i32 : i32
    %1 = arith.extui %0 : i1 to i32
    %c0_i32_0 = arith.constant 0 : i32
    %2 = arith.cmpi ne, %1, %c0_i32_0 : i32
    scf.if %2 {
      %c0_8 = arith.constant 0 : index
      %c0_9 = arith.constant 0 : index
      %11 = vector.load %arg2[%c0_8, %c0_9] : memref<16x32xbf16, #tpu.memory_space<vmem>>, vector<16x32xbf16>
      %12 = arith.extf %11 : vector<16x32xbf16> to vector<16x32xf32>
      %cst_10 = arith.constant dense<0.000000e+00> : vector<16xf32>
      %13 = vector.multi_reduction <add>, %12, %cst_10 [1] : vector<16x32xf32> to vector<16xf32>
      %14 = vector.shape_cast %13 : vector<16xf32> to vector<16x1xf32>
      %cst_11 = arith.constant 3.200000e+01 : f32
      %15 = vector.broadcast %cst_11 : f32 to vector<16x1xf32>
      %16 = arith.divf %14, %15 : vector<16x1xf32>
      %17 = vector.broadcast %16 : vector<16x1xf32> to vector<16x32xf32>
      %18 = arith.subf %12, %17 : vector<16x32xf32>
      %19 = arith.mulf %18, %18 : vector<16x32xf32>
      %cst_12 = arith.constant dense<0.000000e+00> : vector<16xf32>
      %20 = vector.multi_reduction <add>, %19, %cst_12 [1] : vector<16x32xf32> to vector<16xf32>
      %21 = vector.shape_cast %20 : vector<16xf32> to vector<16x1xf32>
      %cst_13 = arith.constant 3.200000e+01 : f32
      %22 = vector.broadcast %cst_13 : f32 to vector<16x1xf32>
      %23 = arith.divf %21, %22 : vector<16x1xf32>
      %cst_14 = arith.constant 9.99999974E-6 : f32
      %24 = vector.broadcast %cst_14 : f32 to vector<16x1xf32>
      %25 = arith.addf %23, %24 : vector<16x1xf32>
      %26 = math.rsqrt %25 : vector<16x1xf32>
      %27 = vector.broadcast %26 : vector<16x1xf32> to vector<16x32xf32>
      %28 = arith.mulf %18, %27 : vector<16x32xf32>
      %c0_15 = arith.constant 0 : index
      %c0_16 = arith.constant 0 : index
      %29 = vector.load %arg3[%c0_15, %c0_16] : memref<1x32xf32, #tpu.memory_space<vmem>>, vector<1x32xf32>
      %30 = vector.broadcast %29 : vector<1x32xf32> to vector<16x32xf32>
      %31 = arith.mulf %28, %30 : vector<16x32xf32>
      %c0_17 = arith.constant 0 : index
      %c0_18 = arith.constant 0 : index
      %32 = vector.load %arg4[%c0_17, %c0_18] : memref<1x32xf32, #tpu.memory_space<vmem>>, vector<1x32xf32>
      %33 = vector.broadcast %32 : vector<1x32xf32> to vector<16x32xf32>
      %34 = arith.addf %31, %33 : vector<16x32xf32>
      %35 = arith.truncf %34 : vector<16x32xf32> to vector<16x32xbf16>
      %c0_19 = arith.constant 0 : index
      %c0_20 = arith.constant 0 : index
      %36 = vector.load %arg8[%c0_19, %c0_20] : memref<16x32xbf16, #tpu.memory_space<vmem>>, vector<16x32xbf16>
      tpu.vector_store %arg8[%c0_19, %c0_20], %35 {strides = array<i32>} : memref<16x32xbf16, #tpu.memory_space<vmem>>, vector<16x32xbf16>,
    } else {
    }
    %c0 = arith.constant 0 : index
    %c0_1 = arith.constant 0 : index
    %3 = vector.load %arg8[%c0, %c0_1] : memref<16x32xbf16, #tpu.memory_space<vmem>>, vector<16x32xbf16>
    %c0_2 = arith.constant 0 : index
    %c0_3 = arith.constant 0 : index
    %4 = vector.load %arg5[%c0_2, %c0_3] : memref<32x96xbf16, #tpu.memory_space<vmem>>, vector<32x96xbf16>
    %cst = arith.constant dense<0.000000e+00> : vector<16x96xf32>
    %5 = tpu.matmul %3, %4, %cst {dimension_numbers = #tpu.dot_dimension_numbers<[1], [0], [0], [1], [0, 0, 1, 1], [], []>} : vector<16x32xbf16>, vector<32x96xbf16>, vector<16x96xf32> -> vector<16x96xf32>
    %c0_4 = arith.constant 0 : index
    %c0_5 = arith.constant 0 : index
    %6 = vector.load %arg6[%c0_4, %c0_5] : memref<1x96xf32, #tpu.memory_space<vmem>>, vector<1x96xf32>
    %7 = vector.broadcast %6 : vector<1x96xf32> to vector<16x96xf32>
    %8 = arith.addf %5, %7 : vector<16x96xf32>
    %9 = arith.truncf %8 : vector<16x96xf32> to vector<16x96xbf16>
    %c0_6 = arith.constant 0 : index
    %c0_7 = arith.constant 0 : index
    %10 = vector.load %arg7[%c0_6, %c0_7] : memref<16x96xbf16, #tpu.memory_space<vmem>>, vector<16x96xbf16>
    tpu.vector_store %arg7[%c0_6, %c0_7], %9 {strides = array<i32>} : memref<16x96xbf16, #tpu.memory_space<vmem>>, vector<16x96xbf16>,
    return
  }
  func.func @transform_0(%arg0: i32, %arg1: i32) -> (i32, i32) {
    %c0_i32 = arith.constant 0 : i32
    %c0_i32_0 = arith.constant 0 : i32
    return %arg0, %c0_i32 : i32, i32
  }
  func.func @transform_1(%arg0: i32, %arg1: i32) -> (i32, i32) {
    %c0_i32 = arith.constant 0 : i32
    %c0_i32_0 = arith.constant 0 : i32
    %c0_i32_1 = arith.constant 0 : i32
    return %c0_i32, %c0_i32_0 : i32, i32
  }
  func.func @transform_2(%arg0: i32, %arg1: i32) -> (i32, i32) {
    %c0_i32 = arith.constant 0 : i32
    %c0_i32_0 = arith.constant 0 : i32
    %c0_i32_1 = arith.constant 0 : i32
    return %c0_i32, %c0_i32_0 : i32, i32
  }
  func.func @transform_3(%arg0: i32, %arg1: i32) -> (i32, i32) {
    %c0_i32 = arith.constant 0 : i32
    %c0_i32_0 = arith.constant 0 : i32
    return %c0_i32, %arg1 : i32, i32
  }
  func.func @transform_4(%arg0: i32, %arg1: i32) -> (i32, i32) {
    %c0_i32 = arith.constant 0 : i32
    %c0_i32_0 = arith.constant 0 : i32
    return %c0_i32, %arg1 : i32, i32
  }
  func.func @transform_5(%arg0: i32, %arg1: i32) -> (i32, i32) {
    %c0_i32 = arith.constant 0 : i32
    return %arg0, %arg1 : i32, i32
  }
}

</mosaic_0001>

<bundles_post_ra>
// kernel: tpu_custom_call.1
= control target key start
LH: loop header
LB: loop body
LE: loop exit
PB: predicated region body
PF: predicated region fallthrough
CT: control target
= control target key end

     0   :  { %10 = vsyncpa [#allocation4], 0  ;;  %s421_s0 = inlined_call_operand.hbm [shape: bf16[16,32], index: 0, kind: input, shape index: {}]   ;;  %s422_s1 = inlined_call_operand.hbm [shape: f32[1,32], index: 1, kind: input, shape index: {}]   ;;  %s423_s2 = inlined_call_operand.vmem [shape: f32[1,32], index: 2, kind: input, shape index: {}]   ;;  %s424_s3 = inlined_call_operand.hbm [shape: bf16[32,96], index: 3, kind: input, shape index: {}]   ;;  %s425_s4 = inlined_call_operand.vmem [shape: f32[1,96], index: 4, kind: input, shape index: {}]   ;;  %s426_s5 = inlined_call_operand.hbm [shape: bf16[16,96], index: 5, kind: output, shape index: {}]  }
   0x1   :  { %11 = vsyncpa [#allocation7], 0  ;;  %s31_s20 = sshll.u32 %s422_s1, 4  ;;  %s32_s20 = int_to_ptr.hbm [resolvable:$true] %s31_s20 }
   0x2   :  { %12 = vsyncpa [#allocation5], 0  ;;  %s352_s21 = smov [#allocation6]   ;;  %s17_s25 = sshll.u32 %s421_s0, 4  ;;  %s18_s25 = int_to_ptr.hbm [resolvable:$true] %s17_s25 }
   0x3   :  { %s33_s22 = sshll.u32 %s352_s21, 4  ;;  %s353_s26 = smov [#allocation3]   ;;  %s34_s22 = int_to_ptr.vmem [resolvable:$true] %s33_s22 }
   0x4   :  { %36 = dma.hbm_to_vmem [thread:$0]  %s32_s20, 16, %s34_s22, [#allocation7]  }
   0x5   :  { %s19_s27 = sshll.u32 %s353_s26, 4  ;;  %s354_s28 = smov 64   ;;  %s20_s27 = int_to_ptr.vmem [resolvable:$true] %s19_s27 }
   0x6   :  { %s355_s29 = smov 4   ;;  %s43_s6 = sshll.u32 %s424_s3, 4  ;;  %s44_s6 = int_to_ptr.hbm [resolvable:$true] %s43_s6 }
   0x7   :  { %25 = dma.hbm_to_vmem [thread:$0]  %s18_s25, 128, %s20_s27, [#allocation4], %s354_s28, %s354_s28, %s355_s29  }
   0x8   :  { %s356_s7 = smov [#allocation8]  }
   0x9   :  { %s45_s8 = sshll.u32 %s356_s7, 4  ;;  %s46_s8 = int_to_ptr.vmem [resolvable:$true] %s45_s8 }
   0xa   :  { %51 = dma.hbm_to_vmem [thread:$0]  %s44_s6, 256, %s46_s8, [#allocation7], %s354_s28, %s354_s28, %s355_s29  }
   0xb   :  { %346 = dma.done.wait [#allocation4], 128  }
   0xc   :  { %347 = vsyncadd [#allocation4], 4294967168 }
   0xd   :  { %348 = dma.done.wait [#allocation7], 272  }
   0xe   :  { %349 = vsyncadd [#allocation7], 4294967024  ;;  %v231_v0 = vld [vmem:[#allocation3] sm:$0xff]   ;;  %vm75_vm0 = vcmask 261120   ;;  %v357_v5 = vmov 32.0   ;;  %v229_v25 = vld [vmem:[#allocation8 + $0x8] sm:$0xff] }
   0xf   :  { %v232_v1 = vunpack.c.l.bf16 %v231_v0  ;;  %v233_v3 = vunpack.c.h.bf16 %v231_v0  ;;  %244 = vrcp.f32 %v357_v5  ;;  %181 = vmatpush.bf16.msra.mxu0 %v229_v25  ;;  %v228_v28 = vld [vmem:[#allocation8] sm:$0xff]  ;;  %v241_v38 = vld [vmem:[#allocation6] ss:$0 sm:$0xff]  ;;  %v242_v41 = vld [vmem:[%s423_s2] ss:$0 sm:$0xff]  ;;  %vm141_vm6 = vcmask 257024  }
  0x10   :  { %v243_v55 = vld [vmem:[%s425_s4] ss:$0 sm:$0xff]  ;;  %vm191_vm9 = vcmask 781312   ;;  %s358_s10 = smov [#allocation9]   ;;  %s200_s14 = sshll.u32 %s426_s5, 4  ;;  %s201_s14 = int_to_ptr.hbm [resolvable:$true] %s200_s14 }
  0x11   :  { %v76_v2 = vsel %vm75_vm0, %v232_v1, 0.0  ;;  %v79_v4 = vsel %vm75_vm0, %v233_v3, 0.0  ;;  %s198_s11 = sshll.u32 %s358_s10, 4  ;;  %s199_s11 = int_to_ptr.vmem [resolvable:$true] %s198_s11 }
  0x12   :  { %77 = vadd.xlane.f32.xlu0 %v76_v2 }
  0x13   :  { %182 = vmatpush.bf16.msra.mxu0 %v228_v28 }
  0x15   :  { %v245_v6 = vpop.eup %244 }
  0x16   :  { %v83_v7 = vmul.f32 32.0, %v245_v6  ;;  %vm87_vm1 = vweird.f32 %v245_v6 }
  0x18   :  { %v84_v8 = vsub.f32 1.0, %v83_v7 }
  0x1a   :  { %80 = vadd.xlane.f32.xlu0 %v79_v4  ;;  %v85_v9 = vmul.f32 %v245_v6, %v84_v8 }
  0x1c   :  { %v86_v10 = vadd.f32 %v245_v6, %v85_v9 }
  0x1e   :  { %v88_v11 = vsel %vm87_vm1, %v245_v6, %v86_v10 }
  0x85   :  { %v78_v12 = vpop.xlane.xlu0 %77 }
  0x86   :  { %v89_v13 = vmul.f32 %v88_v11, %v78_v12 }
  0x88   :  { %v91_v14 = vsub.f32 %v232_v1, %v89_v13 }
  0x8a   :  { %v93_v15 = vmul.f32 %v91_v14, %v91_v14 }
  0x8c   :  { %v95_v16 = vsel %vm75_vm0, %v93_v15, 0.0 }
  0x8d   :  { %96 = vadd.xlane.f32.xlu1 %v95_v16  ;;  %v81_v17 = vpop.xlane.xlu0 %80 }
  0x8e   :  { %v90_v18 = vmul.f32 %v88_v11, %v81_v17 }
  0x90   :  { %v92_v19 = vsub.f32 %v233_v3, %v90_v18 }
  0x92   :  { %v94_v20 = vmul.f32 %v92_v19, %v92_v19 }
  0x94   :  { %v98_v21 = vsel %vm75_vm0, %v94_v20, 0.0 }
  0x95   :  { %99 = vadd.xlane.f32.xlu1 %v98_v21 }
 0x100   :  { %v97_v22 = vpop.xlane.xlu1 %96 }
 0x101   :  { %v101_v23 = vmul.f32 %v97_v22, %v88_v11 }
 0x103   :  { %v103_v24 = vadd.f32 1e-05, %v101_v23 }
 0x105   :  { %246 = vrsqrt.f32 %v103_v24  ;;  %vm111_vm3 = vweird.f32 %v103_v24 }
 0x108   :  { %v100_v26 = vpop.xlane.xlu1 %99 }
 0x109   :  { %v102_v27 = vmul.f32 %v100_v26, %v88_v11 }
 0x10b   :  { %v247_v29 = vpop.eup %246  ;;  %v104_v30 = vadd.f32 1e-05, %v102_v27 }
 0x10c   :  { %v106_v31 = vmul.f32 %v247_v29, %v103_v24  ;;  %vm112_vm2 = vweird.f32 %v247_v29 }
 0x10d   :  { %248 = vrsqrt.f32 %v104_v30  ;;  %vm113_vm4 = vmor %vm111_vm3, %vm112_vm2  ;;  %vm121_vm7 = vweird.f32 %v104_v30 }
 0x10e   :  { %v107_v32 = vmul.f32 %v247_v29, %v106_v31 }
 0x110   :  { %v108_v33 = vmul.f32 0.5, %v107_v32 }
 0x112   :  { %v109_v34 = vsub.f32 1.5, %v108_v33 }
 0x113   :  { %v249_v35 = vpop.eup %248 }
 0x114   :  { %v110_v36 = vmul.f32 %v247_v29, %v109_v34  ;;  %v116_v37 = vmul.f32 %v249_v35, %v104_v30  ;;  %vm122_vm5 = vweird.f32 %v249_v35 }
 0x115   :  { %vm123_vm8 = vmor %vm121_vm7, %vm122_vm5 }
 0x116   :  { %v114_v39 = vsel %vm113_vm4, %v247_v29, %v110_v36  ;;  %v117_v40 = vmul.f32 %v249_v35, %v116_v37 }
 0x117   :  { %v125_v42 = vmul.f32 %v114_v39, %v91_v14 }
 0x118   :  { %v118_v43 = vmul.f32 0.5, %v117_v40 }
 0x119   :  { %v131_v44 = vmul.f32 %v241_v38, %v125_v42 }
 0x11a   :  { %v119_v45 = vsub.f32 1.5, %v118_v43 }
 0x11b   :  { %v137_v46 = vadd.f32 %v242_v41, %v131_v44 }
 0x11c   :  { %v120_v47 = vmul.f32 %v249_v35, %v119_v45 }
 0x11d   :  { %v139_v48 = vpack.c.bf16 %v137_v46, %v137_v46 }
 0x11e   :  { %v124_v49 = vsel %vm123_vm8, %v249_v35, %v120_v47 }
 0x11f   :  { %142 = vst.msk [vmem:[#allocation2] sm:$0xf] %vm141_vm6, %v139_v48  ;;  %v126_v50 = vmul.f32 %v124_v49, %v92_v19 }
 0x121   :  { %v132_v51 = vmul.f32 %v241_v38, %v126_v50 }
 0x123   :  { %v138_v52 = vadd.f32 %v242_v41, %v132_v51 }
 0x125   :  { %v140_v53 = vpack.c.bf16 %v138_v52, %v138_v52 }
 0x127   :  { %143 = vst.msk [vmem:[#allocation2 + $0x4] sm:$0xf] %vm141_vm6, %v140_v53 }
 0x12e   :  { %v227_v54 = vld [vmem:[#allocation2] sm:$0xff] }
 0x12f   :  { %226 = vmatmul.msk.bf16.vlgmr.msra.gmra.mxu0 %vm75_vm0, %v227_v54 }
 0x1ac   :  { %v184_v56 = vpop.f32.mrf.mxu0 }
 0x1ad   :  { %v185_v57 = vadd.f32 %v243_v55, %v184_v56 }
 0x1af   :  { %v189_v58 = vpack.c.bf16 %v185_v57, %v185_v57 }
 0x1b1   :  { %192 = vst.msk [vmem:[#allocation9] sm:$0xf] %vm191_vm9, %v189_v58 }
 0x1b4   :  { %v186_v59 = vpop.f32.mrf.mxu0 }
 0x1b5   :  { %v187_v60 = vadd.f32 %v243_v55, %v186_v59 }
 0x1b7   :  { %v190_v61 = vpack.c.bf16 %v187_v60, %v187_v60 }
 0x1b9   :  { %193 = vst.msk [vmem:[#allocation9 + $0x4] sm:$0xf] %vm191_vm9, %v190_v61 }
 0x1ba   :  { %206 = dma.vmem_to_hbm [thread:$0]  %s199_s11, 128, %s201_s14, [#allocation5], %s354_s28, %s354_s28, %s355_s29  }
 0x1bb   :  { %350 = dma.done.wait [#allocation5], 128  }
 0x1bc   :  { %351 = vsyncadd [#allocation5], 4294967168 }
 0x1bd   :  { %211 = vsyncpa [#allocation4], 1 }
 0x1be   :  { %212 = vsyncpa [#allocation7], 1 }
 0x1bf   :  { %213 = vsyncpa [#allocation5], 1 }

</bundles_post_ra>
